<compile_context>
chip_gen: v7x
topology: tpu7x:2x2x1
jax: 0.10.0
libtpu: 0.0.40
codegen_flags: <defaults>
</compile_context>

<pallas_src>
import jax
import jax.numpy as jnp
from jax.experimental import pallas as pl
from jax.experimental.pallas import tpu as pltpu

INPUT_DIM = 32   # network input
D1 = 64          # Dense 1 output
H = 32           # LSTM hidden
D_OUT = 16       # Dense 2 output (network output)
LANE = 128       # lane width (feature padding target)
SUB = 8          # f32 sublane height (batch padding target)


# --------------- shared cell math (f32 values, all lane-dense) ---------------

def _cell(x, h0, c0, w1, b1, wg, bg, w3, b3):
    """One Dense->tanh->LSTMCell->tanh->Dense step on padded (Bp,128) values."""
    Bp = x.shape[0]
    # Dense(32 -> 64) + tanh; w1 columns [64:) are zero so h1 lanes [64:) stay 0.
    h1 = jnp.tanh(jnp.dot(x, w1, preferred_element_type=jnp.float32) + b1)
    # Pack [h1 | h0] into ONE 128-lane slab: h1 at lanes [0:64), h0 rolled from
    # lanes [0:32) to [64:96) (64-lane roll on 128 lanes: direction-agnostic).
    xh = h1 + pltpu.roll(h0, D1, axis=1)
    # Single dense (128,128) gate matmul; gate columns match PyTorch [i|f|g|o].
    gates = jnp.dot(xh, wg, preferred_element_type=jnp.float32) + bg
    i_g = jax.nn.sigmoid(gates[:, 0 * H:1 * H])
    f_g = jax.nn.sigmoid(gates[:, 1 * H:2 * H])
    g_g = jnp.tanh(gates[:, 2 * H:3 * H])
    o_g = jax.nn.sigmoid(gates[:, 3 * H:4 * H])
    c_new = f_g * c0[:, :H] + i_g * g_g
    h_new = o_g * jnp.tanh(c_new)
    # Re-widen to 128 lanes with explicit zeros so padded lanes of the carried
    # state stay exactly zero (safe to alias / thread back without re-padding).
    zpad = jnp.zeros((Bp, LANE - H), jnp.float32)
    h_full = jnp.concatenate([h_new, zpad], axis=1)
    c_full = jnp.concatenate([c_new, zpad], axis=1)
    # hidden activation after the LSTM (it is not the last layer), then Dense(32->16)
    h_act = jnp.tanh(h_full)
    out = jnp.dot(h_act, w3, preferred_element_type=jnp.float32) + b3
    return out, h_full, c_full


# --------------------------- single-step kernel ------------------------------

def _fused_kernel(x_ref, h0_ref, c0_ref, w1_ref, b1_ref, wg_ref, bg_ref,
                  w3_ref, b3_ref, out_ref, h_out_ref, c_out_ref):
    out, h_full, c_full = _cell(
        x_ref[...], h0_ref[...], c0_ref[...],
        w1_ref[...].astype(jnp.float32), b1_ref[...],
        wg_ref[...].astype(jnp.float32), bg_ref[...],
        w3_ref[...].astype(jnp.float32), b3_ref[...])
    out_ref[...] = out.astype(out_ref.dtype)
    h_out_ref[...] = h_full.astype(h_out_ref.dtype)
    c_out_ref[...] = c_full.astype(c_out_ref.dtype)


def _fused_call(x_pad, h0_pad, c0_pad, pp):
    Bp = x_pad.shape[0]
    vspec = lambda: pl.BlockSpec(memory_space=pltpu.MemorySpace.VMEM)
    out_shapes = tuple(jax.ShapeDtypeStruct((Bp, LANE), jnp.float32)
                       for _ in range(3))
    return pl.pallas_call(
        _fused_kernel,
        out_shape=out_shapes,
        in_specs=[vspec() for _ in range(9)],
        out_specs=tuple(vspec() for _ in range(3)),
        # Thread the padded recurrent state in place: h0 -> h_out, c0 -> c_out.
        input_output_aliases={1: 1, 2: 2},
    )(x_pad, h0_pad, c0_pad,
      pp["w1"], pp["b1"], pp["wg"], pp["bg"], pp["w3"], pp["b3"])


# ------------------ multi-step (sequence) kernel, grid=(T,) ------------------

def _seq_kernel(x_ref, h0_ref, c0_ref, w1_ref, b1_ref, wg_ref, bg_ref,
                w3_ref, b3_ref, out_ref, h_ref, c_ref):
    t = pl.program_id(0)

    # h_ref / c_ref have constant index_maps -> VMEM-resident across the grid;
    # they double as the recurrent carry.
    @pl.when(t == 0)
    def _():
        h_ref[...] = h0_ref[...]
        c_ref[...] = c0_ref[...]

    out, h_full, c_full = _cell(
        x_ref[0], h_ref[...], c_ref[...],
        w1_ref[...].astype(jnp.float32), b1_ref[...],
        wg_ref[...].astype(jnp.float32), bg_ref[...],
        w3_ref[...].astype(jnp.float32), b3_ref[...])

    out_ref[0] = out.astype(out_ref.dtype)
    h_ref[...] = h_full.astype(h_ref.dtype)
    c_ref[...] = c_full.astype(c_ref.dtype)


def _seq_call(x_seq, h0_pad, c0_pad, pp):
    T, Bp, _ = x_seq.shape

    def cspec(shape):  # constant index_map -> fetched once, stays in VMEM
        return pl.BlockSpec(shape, lambda t: (0, 0))

    grid_spec = pltpu.PrefetchScalarGridSpec(
        num_scalar_prefetch=0,
        grid=(T,),
        in_specs=[
            pl.BlockSpec((1, Bp, LANE), lambda t: (t, 0, 0)),   # x streamed over T
            cspec((Bp, LANE)), cspec((Bp, LANE)),               # h0, c0
            cspec((LANE, LANE)), cspec((1, LANE)),              # w1, b1
            cspec((LANE, LANE)), cspec((1, LANE)),              # wg, bg
            cspec((LANE, LANE)), cspec((1, LANE)),              # w3, b3
        ],
        out_specs=(
            pl.BlockSpec((1, Bp, LANE), lambda t: (t, 0, 0)),   # out streamed over T
            cspec((Bp, LANE)), cspec((Bp, LANE)),               # final h, c (carries)
        ),
    )
    out_shapes = (jax.ShapeDtypeStruct((T, Bp, LANE), jnp.float32),
                  jax.ShapeDtypeStruct((Bp, LANE), jnp.float32),
                  jax.ShapeDtypeStruct((Bp, LANE), jnp.float32))
    return pl.pallas_call(
        _seq_kernel,
        out_shape=out_shapes,
        grid_spec=grid_spec,
        compiler_params=pltpu.CompilerParams(
            dimension_semantics=("arbitrary",)),   # recurrent -> sequential axis
    )(x_seq, h0_pad, c0_pad,
      pp["w1"], pp["b1"], pp["wg"], pp["bg"], pp["w3"], pp["b3"])


# ------------------------------- parameters ----------------------------------

def _q_bf16(w):
    """Round a weight to bf16 and back (bf16 is what the kernel stores)."""
    return w.astype(jnp.bfloat16).astype(jnp.float32)


def init_params(key):
    """Logical parameters (PyTorch-shaped, stored transposed as (in, out))."""
    k1, k2, k3, k4, k5, k6, k7, k8 = jax.random.split(key, 8)
    kd1 = 1.0 / jnp.sqrt(INPUT_DIM)
    w1 = _q_bf16(jax.random.uniform(k1, (INPUT_DIM, D1), jnp.float32, -kd1, kd1))
    b1 = jax.random.uniform(k2, (D1,), jnp.float32, -kd1, kd1)
    kl = 1.0 / jnp.sqrt(H)
    w_ih = _q_bf16(jax.random.uniform(k3, (D1, 4 * H), jnp.float32, -kl, kl))
    w_hh = _q_bf16(jax.random.uniform(k4, (H, 4 * H), jnp.float32, -kl, kl))
    b_ih = jax.random.uniform(k5, (4 * H,), jnp.float32, -kl, kl)
    b_hh = jax.random.uniform(k6, (4 * H,), jnp.float32, -kl, kl)
    kd3 = 1.0 / jnp.sqrt(H)
    w3 = _q_bf16(jax.random.uniform(k7, (H, D_OUT), jnp.float32, -kd3, kd3))
    b3 = jax.random.uniform(k8, (D_OUT,), jnp.float32, -kd3, kd3)
    return dict(w1=w1, b1=b1, w_ih=w_ih, w_hh=w_hh, b=b_ih + b_hh,
                w3=w3, b3=b3)


def prepare_padded(p):
    """One-time zero-padding of weights into dense, lane-aligned kernel layouts.

    wg: (128, 128) bf16.  Rows [0:64) = W_ih (h1 lanes), rows [64:96) = W_hh
    (h0 lanes, placed there by the in-kernel roll), rows [96:128) = 0.  Columns
    are the dense 4*H = 128 gate layout [i|f|g|o], same as PyTorch.
    """
    f32, bf16 = jnp.float32, jnp.bfloat16
    w1p = jnp.zeros((LANE, LANE), f32).at[:INPUT_DIM, :D1].set(p["w1"]).astype(bf16)
    b1p = jnp.zeros((1, LANE), f32).at[0, :D1].set(p["b1"])
    wgp = (jnp.zeros((LANE, LANE), f32)
           .at[:D1, :4 * H].set(p["w_ih"])
           .at[D1:D1 + H, :4 * H].set(p["w_hh"])).astype(bf16)
    bgp = jnp.zeros((1, LANE), f32).at[0, :4 * H].set(p["b"])
    w3p = jnp.zeros((LANE, LANE), f32).at[:H, :D_OUT].set(p["w3"]).astype(bf16)
    b3p = jnp.zeros((1, LANE), f32).at[0, :D_OUT].set(p["b3"])
    return dict(w1=w1p, b1=b1p, wg=wgp, bg=bgp, w3=w3p, b3=b3p)


# ---------------------------- forward wrappers --------------------------------

def _padded_batch(B):
    return ((B + SUB - 1) // SUB) * SUB


def get_initial_memory(batch_size):
    """Padded equivalent of SequentialNetworkWithTypes.get_initial_state."""
    Bp = _padded_batch(batch_size)
    z = jnp.zeros((Bp, LANE), jnp.float32)
    return (z, z)


def forward_pallas(state, padded_params, memory=None):
    """Single-step forward (mirrors SequentialNetworkWithTypes.forward).

    `memory`, when given, is the padded (Bp,128) (h, c) pair returned by a
    previous call; padded lanes must be zero (the kernel preserves that).
    """
    B = state.shape[0]
    Bp = _padded_batch(B)
    x_pad = jnp.zeros((Bp, LANE), jnp.float32).at[:B, :INPUT_DIM].set(
        state.astype(jnp.float32))
    if memory is None:
        h0_pad = jnp.zeros((Bp, LANE), jnp.float32)
        c0_pad = jnp.zeros((Bp, LANE), jnp.float32)
    else:
        h0_pad, c0_pad = memory
    out_pad, h_pad, c_pad = _fused_call(x_pad, h0_pad, c0_pad, padded_params)
    return out_pad[:B, :D_OUT], (h_pad, c_pad)


def forward_sequence_pallas(states_seq, padded_params, memory=None):
    """T recurrent steps in ONE pallas_call (weights DMA'd once, grid=(T,))."""
    T, B, _ = states_seq.shape
    Bp = _padded_batch(B)
    x_pad = jnp.zeros((T, Bp, LANE), jnp.float32).at[:, :B, :INPUT_DIM].set(
        states_seq.astype(jnp.float32))
    if memory is None:
        h0_pad = jnp.zeros((Bp, LANE), jnp.float32)
        c0_pad = jnp.zeros((Bp, LANE), jnp.float32)
    else:
        h0_pad, c0_pad = memory
    out_seq, hT_pad, cT_pad = _seq_call(x_pad, h0_pad, c0_pad, padded_params)
    return out_seq[:, :B, :D_OUT], (hT_pad, cT_pad)


def forward_ref(state, p, memory=None):
    """Pure-jnp reference with identical semantics (for verification)."""
    hid = jnp.tanh(state @ p["w1"] + p["b1"])
    if memory is None:
        h0 = jnp.zeros((state.shape[0], H), state.dtype)
        c0 = jnp.zeros((state.shape[0], H), state.dtype)
    else:
        h0, c0 = memory
    gates = hid @ p["w_ih"] + h0 @ p["w_hh"] + p["b"]
    i_g = jax.nn.sigmoid(gates[:, 0 * H:1 * H])
    f_g = jax.nn.sigmoid(gates[:, 1 * H:2 * H])
    g_g = jnp.tanh(gates[:, 2 * H:3 * H])
    o_g = jax.nn.sigmoid(gates[:, 3 * H:4 * H])
    c_new = f_g * c0 + i_g * g_g
    h_new = o_g * jnp.tanh(c_new)
    hid = jnp.tanh(h_new)
    out = hid @ p["w3"] + p["b3"]
    return out, (h_new, c_new)


# ----------------------------------- main -------------------------------------

if __name__ == "__main__":
    key = jax.random.PRNGKey(0)
    key, k_state, k_seq = jax.random.split(key, 3)
    params = init_params(key)
    padded = prepare_padded(params)

    batch = 2
    state = jax.random.normal(k_state, (batch, INPUT_DIM), jnp.float32)

    fwd = jax.jit(forward_pallas)

    # step 1: no memory provided (zero initial LSTM state)
    out, (h_pad, c_pad) = fwd(state, padded)
    jax.block_until_ready((out, h_pad, c_pad))
    ref_out, (ref_h, ref_c) = forward_ref(state, params)
    assert out.shape == (batch, D_OUT)
    assert jnp.allclose(out, ref_out, atol=1e-4, rtol=1e-4)
    assert jnp.allclose(h_pad[:batch, :H], ref_h, atol=1e-4, rtol=1e-4)
    assert jnp.allclose(c_pad[:batch, :H], ref_c, atol=1e-4, rtol=1e-4)
    # padded lanes of the carried state must remain exactly zero
    assert jnp.all(h_pad[:, H:] == 0) and jnp.all(c_pad[:, H:] == 0)

    # step 2: feed the (padded, aliased) recurrent memory straight back in
    out2, (h_pad2, c_pad2) = fwd(state, padded, (h_pad, c_pad))
    jax.block_until_ready((out2, h_pad2, c_pad2))
    ref_out2, (ref_h2, ref_c2) = forward_ref(state, params, (ref_h, ref_c))
    assert jnp.allclose(out2, ref_out2, atol=1e-4, rtol=1e-4)
    assert jnp.allclose(h_pad2[:batch, :H], ref_h2, atol=1e-4, rtol=1e-4)
    assert jnp.allclose(c_pad2[:batch, :H], ref_c2, atol=1e-4, rtol=1e-4)

    # sequence-driven inference: T steps inside one kernel launch
    T = 8
    states_seq = jax.random.normal(k_seq, (T, batch, INPUT_DIM), jnp.float32)
    fwd_seq = jax.jit(forward_sequence_pallas)
    out_seq, (hT_pad, cT_pad) = fwd_seq(states_seq, padded)
    jax.block_until_ready((out_seq, hT_pad, cT_pad))

    ref_mem = None
    ref_outs = []
    for t in range(T):
        o_t, ref_mem = forward_ref(states_seq[t], params, ref_mem)
        ref_outs.append(o_t)
    ref_out_seq = jnp.stack(ref_outs)
    assert out_seq.shape == (T, batch, D_OUT)
    assert jnp.allclose(out_seq, ref_out_seq, atol=1e-4, rtol=1e-4)
    assert jnp.allclose(hT_pad[:batch, :H], ref_mem[0], atol=1e-4, rtol=1e-4)
    assert jnp.allclose(cT_pad[:batch, :H], ref_mem[1], atol=1e-4, rtol=1e-4)

    print("KERNEL_OK")
</pallas_src>

<mosaic_0001>
module attributes {stable_mosaic.version = 11 : i64} {
  func.func @_fused_kernel(%arg0: memref<8x128xf32, #tpu.memory_space<vmem>>, %arg1: memref<8x128xf32, #tpu.memory_space<vmem>>, %arg2: memref<8x128xf32, #tpu.memory_space<vmem>>, %arg3: memref<128x128xbf16, #tpu.memory_space<vmem>>, %arg4: memref<1x128xf32, #tpu.memory_space<vmem>>, %arg5: memref<128x128xbf16, #tpu.memory_space<vmem>>, %arg6: memref<1x128xf32, #tpu.memory_space<vmem>>, %arg7: memref<128x128xbf16, #tpu.memory_space<vmem>>, %arg8: memref<1x128xf32, #tpu.memory_space<vmem>>, %arg9: memref<8x128xf32, #tpu.memory_space<vmem>>, %arg10: memref<8x128xf32, #tpu.memory_space<vmem>>, %arg11: memref<8x128xf32, #tpu.memory_space<vmem>>) attributes {dimension_semantics = [], scalar_prefetch = 0 : i64, scratch_operands = 0 : i64, tpu.core_type = #tpu.core_type<tc>} {
    %c0 = arith.constant 0 : index
    %c0_0 = arith.constant 0 : index
    %0 = vector.load %arg0[%c0, %c0_0] : memref<8x128xf32, #tpu.memory_space<vmem>>, vector<8x128xf32>
    %c0_1 = arith.constant 0 : index
    %c0_2 = arith.constant 0 : index
    %1 = vector.load %arg1[%c0_1, %c0_2] : memref<8x128xf32, #tpu.memory_space<vmem>>, vector<8x128xf32>
    %c0_3 = arith.constant 0 : index
    %c0_4 = arith.constant 0 : index
    %2 = vector.load %arg2[%c0_3, %c0_4] : memref<8x128xf32, #tpu.memory_space<vmem>>, vector<8x128xf32>
    %c0_5 = arith.constant 0 : index
    %c0_6 = arith.constant 0 : index
    %3 = vector.load %arg3[%c0_5, %c0_6] : memref<128x128xbf16, #tpu.memory_space<vmem>>, vector<128x128xbf16>
    %4 = arith.extf %3 : vector<128x128xbf16> to vector<128x128xf32>
    %c0_7 = arith.constant 0 : index
    %c0_8 = arith.constant 0 : index
    %5 = vector.load %arg4[%c0_7, %c0_8] : memref<1x128xf32, #tpu.memory_space<vmem>>, vector<1x128xf32>
    %c0_9 = arith.constant 0 : index
    %c0_10 = arith.constant 0 : index
    %6 = vector.load %arg5[%c0_9, %c0_10] : memref<128x128xbf16, #tpu.memory_space<vmem>>, vector<128x128xbf16>
    %7 = arith.extf %6 : vector<128x128xbf16> to vector<128x128xf32>
    %c0_11 = arith.constant 0 : index
    %c0_12 = arith.constant 0 : index
    %8 = vector.load %arg6[%c0_11, %c0_12] : memref<1x128xf32, #tpu.memory_space<vmem>>, vector<1x128xf32>
    %c0_13 = arith.constant 0 : index
    %c0_14 = arith.constant 0 : index
    %9 = vector.load %arg7[%c0_13, %c0_14] : memref<128x128xbf16, #tpu.memory_space<vmem>>, vector<128x128xbf16>
    %10 = arith.extf %9 : vector<128x128xbf16> to vector<128x128xf32>
    %c0_15 = arith.constant 0 : index
    %c0_16 = arith.constant 0 : index
    %11 = vector.load %arg8[%c0_15, %c0_16] : memref<1x128xf32, #tpu.memory_space<vmem>>, vector<1x128xf32>
    %cst = arith.constant dense<0.000000e+00> : vector<8x128xf32>
    %12 = tpu.matmul %0, %4, %cst {dimension_numbers = #tpu.dot_dimension_numbers<[1], [0], [0], [1], [0, 0, 1, 1], [], []>} : vector<8x128xf32>, vector<128x128xf32>, vector<8x128xf32> -> vector<8x128xf32>
    %13 = vector.broadcast %5 : vector<1x128xf32> to vector<8x128xf32>
    %14 = arith.addf %12, %13 : vector<8x128xf32>
    %15 = math.tanh %14 : vector<8x128xf32>
    %c64_i32 = arith.constant 64 : i32
    %16 = tpu.dynamic_rotate %1 by %c64_i32 dim 1 : vector<8x128xf32>, i32 -> vector<8x128xf32>
    %17 = arith.addf %15, %16 : vector<8x128xf32>
    %cst_17 = arith.constant dense<0.000000e+00> : vector<8x128xf32>
    %18 = tpu.matmul %17, %7, %cst_17 {dimension_numbers = #tpu.dot_dimension_numbers<[1], [0], [0], [1], [0, 0, 1, 1], [], []>} : vector<8x128xf32>, vector<128x128xf32>, vector<8x128xf32> -> vector<8x128xf32>
    %19 = vector.broadcast %8 : vector<1x128xf32> to vector<8x128xf32>
    %20 = arith.addf %18, %19 : vector<8x128xf32>
    %21 = vector.extract_strided_slice %20 {offsets = [0, 0], sizes = [8, 32], strides = [1, 1]} : vector<8x128xf32> to vector<8x32xf32>
    %22 = arith.negf %21 : vector<8x32xf32>
    %23 = math.exp %22 : vector<8x32xf32>
    %cst_18 = arith.constant 1.000000e+00 : f32
    %24 = vector.broadcast %cst_18 : f32 to vector<8x32xf32>
    %25 = arith.addf %24, %23 : vector<8x32xf32>
    %26 = arith.divf %24, %25 : vector<8x32xf32>
    %27 = vector.extract_strided_slice %20 {offsets = [0, 32], sizes = [8, 32], strides = [1, 1]} : vector<8x128xf32> to vector<8x32xf32>
    %28 = arith.negf %27 : vector<8x32xf32>
    %29 = math.exp %28 : vector<8x32xf32>
    %cst_19 = arith.constant 1.000000e+00 : f32
    %30 = vector.broadcast %cst_19 : f32 to vector<8x32xf32>
    %31 = arith.addf %30, %29 : vector<8x32xf32>
    %32 = arith.divf %30, %31 : vector<8x32xf32>
    %33 = vector.extract_strided_slice %20 {offsets = [0, 64], sizes = [8, 32], strides = [1, 1]} : vector<8x128xf32> to vector<8x32xf32>
    %34 = math.tanh %33 : vector<8x32xf32>
    %35 = vector.extract_strided_slice %20 {offsets = [0, 96], sizes = [8, 32], strides = [1, 1]} : vector<8x128xf32> to vector<8x32xf32>
    %36 = arith.negf %35 : vector<8x32xf32>
    %37 = math.exp %36 : vector<8x32xf32>
    %cst_20 = arith.constant 1.000000e+00 : f32
    %38 = vector.broadcast %cst_20 : f32 to vector<8x32xf32>
    %39 = arith.addf %38, %37 : vector<8x32xf32>
    %40 = arith.divf %38, %39 : vector<8x32xf32>
    %41 = vector.extract_strided_slice %2 {offsets = [0, 0], sizes = [8, 32], strides = [1, 1]} : vector<8x128xf32> to vector<8x32xf32>
    %42 = arith.mulf %32, %41 : vector<8x32xf32>
    %43 = arith.mulf %26, %34 : vector<8x32xf32>
    %44 = arith.addf %42, %43 : vector<8x32xf32>
    %45 = math.tanh %44 : vector<8x32xf32>
    %46 = arith.mulf %40, %45 : vector<8x32xf32>
    %cst_21 = arith.constant 0.000000e+00 : f32
    %47 = vector.broadcast %cst_21 : f32 to vector<8x96xf32>
    %48 = tpu.concatenate %46, %47 in 1 : vector<8x32xf32>, vector<8x96xf32> -> vector<8x128xf32>
    %49 = tpu.concatenate %44, %47 in 1 : vector<8x32xf32>, vector<8x96xf32> -> vector<8x128xf32>
    %50 = math.tanh %48 : vector<8x128xf32>
    %cst_22 = arith.constant dense<0.000000e+00> : vector<8x128xf32>
    %51 = tpu.matmul %50, %10, %cst_22 {dimension_numbers = #tpu.dot_dimension_numbers<[1], [0], [0], [1], [0, 0, 1, 1], [], []>} : vector<8x128xf32>, vector<128x128xf32>, vector<8x128xf32> -> vector<8x128xf32>
    %52 = vector.broadcast %11 : vector<1x128xf32> to vector<8x128xf32>
    %53 = arith.addf %51, %52 : vector<8x128xf32>
    %c0_23 = arith.constant 0 : index
    %c0_24 = arith.constant 0 : index
    %54 = vector.load %arg9[%c0_23, %c0_24] : memref<8x128xf32, #tpu.memory_space<vmem>>, vector<8x128xf32>
    tpu.vector_store %arg9[%c0_23, %c0_24], %53 {strides = array<i32>} : memref<8x128xf32, #tpu.memory_space<vmem>>, vector<8x128xf32>,
    %c0_25 = arith.constant 0 : index
    %c0_26 = arith.constant 0 : index
    %55 = vector.load %arg10[%c0_25, %c0_26] : memref<8x128xf32, #tpu.memory_space<vmem>>, vector<8x128xf32>
    tpu.vector_store %arg10[%c0_25, %c0_26], %48 {strides = array<i32>} : memref<8x128xf32, #tpu.memory_space<vmem>>, vector<8x128xf32>,
    %c0_27 = arith.constant 0 : index
    %c0_28 = arith.constant 0 : index
    %56 = vector.load %arg11[%c0_27, %c0_28] : memref<8x128xf32, #tpu.memory_space<vmem>>, vector<8x128xf32>
    tpu.vector_store %arg11[%c0_27, %c0_28], %49 {strides = array<i32>} : memref<8x128xf32, #tpu.memory_space<vmem>>, vector<8x128xf32>,
    return
  }
}

</mosaic_0001>

<bundles_post_ra>
// kernel: forward_pallas.1
= control target key start
LH: loop header
LB: loop body
LE: loop exit
PB: predicated region body
PF: predicated region fallthrough
CT: control target
= control target key end

     0   :  { %17 = vsyncpa [#allocation3], 0  ;;  %s1090_s0 = inlined_call_operand.vmem [shape: f32[8,128], index: 0, kind: input, shape index: {}]   ;;  %s1091_s1 = inlined_call_operand.vmem [shape: f32[8,128], index: 1, kind: input, shape index: {}, may-alias: {1,10}]   ;;  %s1092_s2 = inlined_call_operand.vmem [shape: f32[8,128], index: 2, kind: input, shape index: {}, may-alias: {2,11}]   ;;  %s1093_s3 = inlined_call_operand.hbm [shape: bf16[128,128], index: 3, kind: input, shape index: {}]   ;;  %s1094_s4 = inlined_call_operand.vmem [shape: f32[1,128], index: 4, kind: input, shape index: {}]   ;;  %s1095_s5 = inlined_call_operand.hbm [shape: bf16[128,128], index: 5, kind: input, shape index: {}]   ;;  %s1096_s6 = inlined_call_operand.vmem [shape: f32[1,128], index: 6, kind: input, shape index: {}]   ;;  %s1097_s7 = inlined_call_operand.hbm [shape: bf16[128,128], index: 7, kind: input, shape index: {}]   ;;  %s1098_s8 = inlined_call_operand.vmem [shape: f32[1,128], index: 8, kind: input, shape index: {}]   ;;  %s1099_s9 = inlined_call_operand.vmem [shape: f32[8,128], index: 9, kind: output, shape index: {0}]   ;;  %s1100_s10 = inlined_call_operand.vmem [shape: f32[8,128], index: 10, kind: output, shape index: {1}, may-alias: {1,10}]   ;;  %s1101_s11 = inlined_call_operand.vmem [shape: f32[8,128], index: 11, kind: output, shape index: {2}, may-alias: {2,11}]  }
   0x1   :  { %18 = vsyncpa [#allocation5], 0  ;;  %s908_s17 = smov [#allocation4]   ;;  %s909_s19 = smov [#allocation2]  }
   0x2   :  { %s44_s18 = sshll.u32 %s908_s17, 4  ;;  %s30_s20 = sshll.u32 %s909_s19, 4  ;;  %s45_s18 = int_to_ptr.vmem [resolvable:$true] %s44_s18  ;;  %s978_s20 = int_to_ptr.vmem [resolvable:$true] %s30_s20 }
   0x3   :  { %s838_s23 = scalar_lea.hbm %s1095_s5, 1024 }
   0x4   :  { %p839_p0 = scmp.ne.s32.totalorder %s1095_s5, %s838_s23  ;;  %p842_p1 = scmp.lt.u32.totalorder %s838_s23, %s1095_s5 }
   0x6   :  { %p844_p2 = pnand %p842_p1, %p839_p0 }
   0x8   :  { %847 = shalt.err (!%p844_p2)
}
   0x9   :  { %s848_s28 = scalar_lea.vmem %s45_s18, 1024  ;;  %p853_p4 = scmp.lt.s32.totalorder %s45_s18, %s45_s18 }
   0xa   :  { %p849_p3 = scmp.ne.s32.totalorder %s45_s18, %s848_s28  ;;  %p854_p5 = scmp.lt.s32.totalorder %s848_s28, %s848_s28 }
   0xc   :  { %p855_p6 = por %p854_p5, %p853_p4 }
   0xe   :  { %p856_p7 = pnand %p855_p6, %p849_p3 }
  0x10   :  { %859 = shalt.err (!%p856_p7)
}
  0x11   :  { %s910_s29 = smov 64   ;;  %s911_s30 = smov 4  }
  0x12   :  { %50 = dma.hbm_to_vmem [thread:$0]  %s1095_s5, 1024, %s45_s18, [#allocation5], %s910_s29, %s910_s29, %s911_s30  }
  0x13   :  { %s860_s16 = scalar_lea.hbm %s1093_s3, 1024 }
  0x14   :  { %p861_p8 = scmp.ne.s32.totalorder %s1093_s3, %s860_s16  ;;  %p864_p9 = scmp.lt.u32.totalorder %s860_s16, %s1093_s3 }
  0x16   :  { %p866_p10 = pnand %p864_p9, %p861_p8 }
  0x18   :  { %869 = shalt.err (!%p866_p10)
}
  0x19   :  { %s870_s23 = scalar_lea.vmem %s978_s20, 1024  ;;  %p875_p12 = scmp.lt.s32.totalorder %s978_s20, %s978_s20 }
  0x1a   :  { %p871_p11 = scmp.ne.s32.totalorder %s978_s20, %s870_s23  ;;  %p876_p13 = scmp.lt.s32.totalorder %s870_s23, %s870_s23 }
  0x1c   :  { %p877_p0 = por %p876_p13, %p875_p12 }
  0x1e   :  { %p878_p1 = pnand %p877_p0, %p871_p11 }
  0x20   :  { %881 = shalt.err (!%p878_p1)
}
  0x21   :  { %36 = dma.hbm_to_vmem [thread:$0]  %s1093_s3, 1024, %s978_s20, [#allocation3], %s910_s29, %s910_s29, %s911_s30  }
  0x22   :  { %s912_s24 = smov [#allocation6]   ;;  %s882_s28 = scalar_lea.hbm %s1097_s7, 1024 }
  0x23   :  { %s58_s25 = sshll.u32 %s912_s24, 4  ;;  %p883_p2 = scmp.ne.s32.totalorder %s1097_s7, %s882_s28  ;;  %s59_s25 = int_to_ptr.vmem [resolvable:$true] %s58_s25 }
  0x24   :  { %p886_p3 = scmp.lt.u32.totalorder %s882_s28, %s1097_s7 }
  0x26   :  { %p888_p4 = pnand %p886_p3, %p883_p2 }
  0x28   :  { %891 = shalt.err (!%p888_p4)
}
  0x29   :  { %s892_s16 = scalar_lea.vmem %s59_s25, 1024  ;;  %p897_p6 = scmp.lt.s32.totalorder %s59_s25, %s59_s25 }
  0x2a   :  { %p893_p5 = scmp.ne.s32.totalorder %s59_s25, %s892_s16  ;;  %p898_p7 = scmp.lt.s32.totalorder %s892_s16, %s892_s16 }
  0x2c   :  { %p899_p8 = por %p898_p7, %p897_p6 }
  0x2e   :  { %p900_p9 = pnand %p899_p8, %p893_p5 }
  0x30   :  { %903 = shalt.err (!%p900_p9)
}
  0x31   :  { %64 = dma.hbm_to_vmem [thread:$0]  %s1097_s7, 1024, %s59_s25, [#allocation5], %s910_s29, %s910_s29, %s911_s30  }
  0x32   :  { %904 = dma.done.wait [#allocation3], 1024  }
  0x33   :  { %905 = vsyncadd [#allocation3], 4294966272 }
  0x34   :  { %906 = dma.done.wait [#allocation5], 2048  }
  0x35   :  { %907 = vsyncadd [#allocation5], 4294965248  ;;  %v913_v0 = vmov 0.0|0.0   ;;  %vm914_vm0 = vmmov 0   ;;  %v915_v1 = vmov 0.0   ;;  %v472_v2 = vld [vmem:[#allocation2] sm:$0xff]  }
  0x36   :  { %744 = vmatprep.subr.bf16.mxu0 %v913_v0  ;;  %671 = vmatprep.mubr.msk.f32.mxu0 %vm914_vm0, %v915_v1  ;;  %v567_v3 = vld [vmem:[#allocation2 + $0x8] sm:$0xff]   ;;  %v77_v4 = vld [vmem:[%s1091_s1] sm:$0xff]  ;;  %v568_v7 = vld [vmem:[#allocation2 + $0x10] sm:$0xff]   ;;  %s916_s21 = smov 32   ;;  %vm366_vm1 = vcmask 261120  }
  0x37   :  { %768 = vmatprep.subr.bf16.mxu1 %v913_v0  ;;  %706 = vmatprep.mubr.msk.f32.mxu1 %vm914_vm0, %v915_v1  ;;  %v504_v5 = vld [vmem:[#allocation4] sm:$0xff]   ;;  %v574_v6 = vld [vmem:[#allocation4 + $0x8] sm:$0xff]   ;;  %v575_v8 = vld [vmem:[#allocation4 + $0x10] sm:$0xff]  }
  0x38   :  { %746 = vmatpush3.bf16.msra.mxu0 %v472_v2  ;;  %255 = vrot.lane.b32.xlu0 %v77_v4, %s910_s29  ;;  %v569_v9 = vld [vmem:[#allocation2 + $0x18] sm:$0xff]   ;;  %v570_v11 = vld [vmem:[#allocation2 + $0x20] sm:$0xff]   ;;  %v571_v12 = vld [vmem:[#allocation2 + $0x28] sm:$0xff]  }
  0x39   :  { %747 = vmatprep.subr.bf16.mxu0 %v913_v0  ;;  %770 = vmatpush3.bf16.msra.mxu1 %v504_v5  ;;  %v576_v10 = vld [vmem:[#allocation4 + $0x18] sm:$0xff]   ;;  %v572_v13 = vld [vmem:[#allocation2 + $0x30] sm:$0xff]   ;;  %v76_v15 = vld [vmem:[%s1090_s0] sm:$0xff] }
  0x3a   :  { %771 = vmatprep.subr.bf16.mxu1 %v913_v0  ;;  %v573_v14 = vld [vmem:[#allocation2 + $0x38] sm:$0xff]   ;;  %v577_v16 = vld [vmem:[#allocation4 + $0x20] sm:$0xff]   ;;  %v578_v17 = vld [vmem:[#allocation4 + $0x28] sm:$0xff]  }
  0x3b   :  { %v579_v18 = vld [vmem:[#allocation4 + $0x30] sm:$0xff]   ;;  %v580_v19 = vld [vmem:[#allocation4 + $0x38] sm:$0xff]   ;;  %v78_v20 = vld [vmem:[%s1092_s2] sm:$0xff]  ;;  %s917_s2 = smov 96  }
  0x3c   :  { %749 = vmatpush3.bf16.msra.mxu0 %v567_v3  ;;  %342 = vrot.lane.b32.xlu1 %v78_v20, %s916_s21  ;;  %v467_v21 = vld [vmem:[%s1094_s4] ss:$0 sm:$0xff]  ;;  %v581_v44 = vld [vmem:[#allocation6 + $0x8] sm:$0xff]   ;;  %v582_v45 = vld [vmem:[#allocation6 + $0x10] sm:$0xff]  }
  0x3d   :  { %750 = vmatprep.subr.bf16.mxu0 %v913_v0  ;;  %773 = vmatpush3.bf16.msra.mxu1 %v574_v6  ;;  %v468_v28 = vld [vmem:[%s1096_s6] ss:$0 sm:$0xff]  ;;  %v583_v47 = vld [vmem:[#allocation6 + $0x18] sm:$0xff]   ;;  %v585_v49 = vld [vmem:[#allocation6 + $0x28] sm:$0xff]  }
  0x3e   :  { %774 = vmatprep.subr.bf16.mxu1 %v913_v0  ;;  %v536_v43 = vld [vmem:[#allocation6] sm:$0xff]   ;;  %v586_v50 = vld [vmem:[#allocation6 + $0x30] sm:$0xff]   ;;  %v587_v51 = vld [vmem:[#allocation6 + $0x38] sm:$0xff]  }
  0x3f   :  { %v584_v48 = vld [vmem:[#allocation6 + $0x20] sm:$0xff]  }
  0x40   :  { %752 = vmatpush3.bf16.msra.mxu0 %v568_v7  ;;  %v470_v59 = vld [vmem:[%s1098_s8] ss:$0 sm:$0xff] }
  0x41   :  { %753 = vmatprep.subr.bf16.mxu0 %v913_v0  ;;  %776 = vmatpush3.bf16.msra.mxu1 %v575_v8 }
  0x42   :  { %777 = vmatprep.subr.bf16.mxu1 %v913_v0 }
  0x44   :  { %755 = vmatpush3.bf16.msra.mxu0 %v569_v9 }
  0x45   :  { %756 = vmatprep.subr.bf16.mxu0 %v913_v0  ;;  %779 = vmatpush3.bf16.msra.mxu1 %v576_v10 }
  0x46   :  { %780 = vmatprep.subr.bf16.mxu1 %v913_v0 }
  0x48   :  { %758 = vmatpush3.bf16.msra.mxu0 %v570_v11 }
  0x49   :  { %759 = vmatprep.subr.bf16.mxu0 %v913_v0  ;;  %782 = vmatpush3.bf16.msra.mxu1 %v577_v16 }
  0x4a   :  { %783 = vmatprep.subr.bf16.mxu1 %v913_v0 }
  0x4c   :  { %761 = vmatpush3.bf16.msra.mxu0 %v571_v12 }
  0x4d   :  { %762 = vmatprep.subr.bf16.mxu0 %v913_v0  ;;  %785 = vmatpush3.bf16.msra.mxu1 %v578_v17 }
  0x4e   :  { %786 = vmatprep.subr.bf16.mxu1 %v913_v0 }
  0x50   :  { %764 = vmatpush3.bf16.msra.mxu0 %v572_v13 }
  0x51   :  { %765 = vmatprep.subr.bf16.mxu0 %v913_v0  ;;  %788 = vmatpush3.bf16.msra.mxu1 %v579_v18 }
  0x52   :  { %789 = vmatprep.subr.bf16.mxu1 %v913_v0 }
  0x54   :  { %767 = vmatpush3.bf16.msra.mxu0 %v573_v14 }
  0x55   :  { %792 = vmatprep.subr.bf16.mxu0 %v913_v0  ;;  %791 = vmatpush3.bf16.msra.mxu1 %v580_v19 }
  0x57   :  { %672 = vmatmul.mubr.f32.vlgmr.msra.gmra.mrb[0].mxu0 %v76_v15 }
  0x58   :  { %741 = vmatprep.mubr.msk.f32.mxu0 %vm914_vm0, %v915_v1  ;;  %794 = vmatpush3.bf16.msra.mxu0 %v536_v43 }
  0x59   :  { %795 = vmatprep.subr.bf16.mxu0 %v913_v0 }
  0x5c   :  { %797 = vmatpush3.bf16.msra.mxu0 %v581_v44 }
  0x5d   :  { %798 = vmatprep.subr.bf16.mxu0 %v913_v0 }
  0x60   :  { %800 = vmatpush3.bf16.msra.mxu0 %v582_v45 }
  0x61   :  { %801 = vmatprep.subr.bf16.mxu0 %v913_v0 }
  0x64   :  { %803 = vmatpush3.bf16.msra.mxu0 %v583_v47 }
  0x65   :  { %804 = vmatprep.subr.bf16.mxu0 %v913_v0 }
  0x68   :  { %806 = vmatpush3.bf16.msra.mxu0 %v584_v48 }
  0x69   :  { %807 = vmatprep.subr.bf16.mxu0 %v913_v0 }
  0x6c   :  { %809 = vmatpush3.bf16.msra.mxu0 %v585_v49 }
  0x6d   :  { %810 = vmatprep.subr.bf16.mxu0 %v913_v0 }
  0x70   :  { %812 = vmatpush3.bf16.msra.mxu0 %v586_v50 }
  0x71   :  { %813 = vmatprep.subr.bf16.mxu0 %v913_v0 }
  0x74   :  { %815 = vmatpush3.bf16.msra.mxu0 %v587_v51 }
  0xaa   :  { %v256_v25 = vpop.permute.xlu0 %255 }
  0xae   :  { %v343_v39 = vpop.permute.xlu1 %342 }
 0x12a   :  { %v250_v22 = vpop.f32.mrb[0].mxu0 }
 0x12b   :  { %v251_v23 = vadd.f32 %v467_v21, %v250_v22  ;;  %v673_v24 = vpop.f32.mrb[1].mxu0 }
 0x12d   :  { %826 = vtanh.f32 %v251_v23 }
 0x137   :  { %v827_v26 = vpop.eup %826 }
 0x138   :  { %v257_v27 = vadd.f32 %v827_v26, %v256_v25 }
 0x13a   :  { %707 = vmatmul.mubr.f32.vlgmr.msra.gmra.mrb[0].mxu1 %v257_v27 }
 0x20d   :  { %v330_v29 = vpop.f32.mrb[0].mxu1 }
 0x20e   :  { %v331_v30 = vadd.f32 %v468_v28, %v330_v29  ;;  %v708_v31 = vpop.f32.mrb[1].mxu1 }
 0x210   :  { %828 = vtanh.f32 %v331_v30  ;;  %v469_v33 = vmul.f32 -1.442695, %v331_v30 }
 0x212   :  { %830 = vpow2.f32 %v469_v33 }
 0x21a   :  { %v829_v32 = vpop.eup %828 }
 0x21b   :  { %347 = vrot.lane.b32.xlu0 %v829_v32, %s910_s29 }
 0x21c   :  { %v831_v34 = vpop.eup %830 }
 0x21d   :  { %v337_v35 = vadd.f32 1.0, %v831_v34 }
 0x21f   :  { %832 = vrcp.f32 %v337_v35 }
 0x229   :  { %v833_v36 = vpop.eup %832 }
 0x22a   :  { %v345_v40 = vmul.f32 %v833_v36, %v343_v39 }
 0x28d   :  { %v348_v37 = vpop.permute.xlu0 %347 }
 0x28e   :  { %v350_v38 = vmul.f32 %v833_v36, %v348_v37 }
 0x290   :  { %352 = vrot.lane.b32.xlu1 %v350_v38, %s916_s21 }
 0x302   :  { %v353_v41 = vpop.permute.xlu1 %352 }
 0x303   :  { %v355_v42 = vadd.f32 %v353_v41, %v345_v40 }
 0x305   :  { %834 = vtanh.f32 %v355_v42 }
 0x30f   :  { %v835_v46 = vpop.eup %834 }
 0x310   :  { %358 = vrot.lane.b32.xlu0 %v835_v46, %s910_s29 }
 0x314   :  { %369 = vrot.lane.b32.xlu0 %v355_v42, %s917_s2 }
 0x382   :  { %v359_v52 = vpop.permute.xlu0 %358 }
 0x383   :  { %v361_v53 = vmul.f32 %v833_v36, %v359_v52 }
 0x385   :  { %363 = vrot.lane.b32.xlu1 %v361_v53, %s916_s21 }
 0x386   :  { %v370_v54 = vpop.permute.xlu0 %369 }
 0x387   :  { %v372_v55 = vsel %vm366_vm1, %v370_v54, 0.0 }
 0x388   :  { %452 = vst [vmem:[%s1101_s11] sm:$0xff] %v372_v55 }
 0x3f7   :  { %v364_v56 = vpop.permute.xlu1 %363 }
 0x3f8   :  { %v367_v57 = vsel %vm366_vm1, %v364_v56, 0.0 }
 0x3f9   :  { %836 = vtanh.f32 %v367_v57  ;;  %451 = vst [vmem:[%s1100_s10] sm:$0xff] %v367_v57 }
 0x403   :  { %v837_v58 = vpop.eup %836 }
 0x404   :  { %742 = vmatmul.mubr.f32.vlgmr.msra.gmra.mrb[2].mxu0 %v837_v58 }
 0x4d7   :  { %v446_v60 = vpop.f32.mrb[2].mxu0 }
 0x4d8   :  { %v447_v61 = vadd.f32 %v470_v59, %v446_v60  ;;  %v743_v62 = vpop.f32.mrb[3].mxu0 }
 0x4da   :  { %450 = vst [vmem:[%s1099_s9] sm:$0xff] %v447_v61 }
 0x4db   :  { %465 = vsyncpa [#allocation3], 1 }
 0x4dc   :  { %466 = vsyncpa [#allocation5], 1 }

</bundles_post_ra>
